<compile_context>
chip_gen: v7x
topology: tpu7x:2x2x1
jax: 0.10.0
libtpu: 0.0.40
codegen_flags: <defaults>
</compile_context>

<pallas_src>
import jax
import jax.numpy as jnp
from jax.experimental import pallas as pl
from jax.experimental.pallas import tpu as pltpu


# ----------------------------------------------------------------------------
# Kernel
# ----------------------------------------------------------------------------
def _aspect_mean_kernel(a_ref, o_ref):
    """a_ref: [tB, L, E]  ->  o_ref: [tB, E] masked-length mean over L."""
    a = a_ref[...].astype(jnp.float32)                       # [tB, L, E]
    # A token is "real" iff any embedding element is non-zero (torch rule:
    # sum(aspect != 0, dim=2) != 0).  Lane reduce over E -> XLU.
    token_present = jnp.max(jnp.abs(a), axis=2) != 0.0       # [tB, L]
    aspect_len = jnp.sum(token_present.astype(jnp.float32),
                         axis=1, keepdims=True)               # [tB, 1]
    summed = jnp.sum(a, axis=1)                               # [tB, E] sublane reduce
    # Exact division keeps torch's 0/0 -> NaN, x/0 -> inf behaviour.
    o_ref[...] = (summed / aspect_len).astype(o_ref.dtype)


# ----------------------------------------------------------------------------
# Wrapper
# ----------------------------------------------------------------------------
_VMEM_BLOCK_BUDGET = 16 * 1024 * 1024   # bytes for double-buffered in+out blocks
_VMEM_LIMIT_BYTES = 32 * 1024 * 1024    # scoped VMEM limit (safe on v5e/v6e/v7x)


def _pick_batch_tile(B, L, E, in_itemsize, out_itemsize):
    """Largest batch tile that divides B, is sublane-aligned (or == B) and
    whose double-buffered input + output blocks fit the VMEM budget."""
    def fits(tb):
        return (2 * tb * L * E * in_itemsize
                + 2 * tb * E * out_itemsize) <= _VMEM_BLOCK_BUDGET

    for tb in range(min(B, 1024), 0, -1):
        if B % tb != 0:
            continue
        if tb != B and tb % 8 != 0:      # (8,128) constraint on the (tB, E) output block
            continue
        if fits(tb):
            return tb
    return None


def _aspect_mean_jnp(aspect):
    a = aspect.astype(jnp.float32)
    len_tmp = jnp.sum((a != 0.0).astype(jnp.int32), axis=2)
    aspect_len = jnp.sum((len_tmp != 0).astype(jnp.int32), axis=1,
                         keepdims=True).astype(jnp.float32)
    return jnp.sum(a, axis=1) / aspect_len


def aspect_mean(aspect, max_sen_len, if_expand=False, batch_block=None):
    """Pallas implementation of AspectMean.forward.

    aspect: [B, L, E] float array.
    Returns [B, E] (or [B, max_sen_len, E] when if_expand=True).
    """
    B, L, E = aspect.shape
    # torch: aspect.sum(dim=1).div(aspect_len.float()) -> promote with float32.
    out_dtype = jnp.promote_types(aspect.dtype, jnp.float32)

    tb = batch_block if batch_block is not None else _pick_batch_tile(
        B, L, E,
        jnp.dtype(aspect.dtype).itemsize,
        jnp.dtype(out_dtype).itemsize)

    use_pallas = (
        tb is not None
        and B % tb == 0
        and (tb % 8 == 0 or tb == B)
        and E >= 128            # E < 128 -> masked partial lane stores: not worth a kernel
    )

    if use_pallas:
        grid = (B // tb,)
        mean = pl.pallas_call(
            _aspect_mean_kernel,
            out_shape=jax.ShapeDtypeStruct((B, E), out_dtype),
            grid=grid,
            in_specs=[pl.BlockSpec((tb, L, E), lambda i: (i, 0, 0))],
            out_specs=pl.BlockSpec((tb, E), lambda i: (i, 0)),
            compiler_params=pltpu.CompilerParams(
                dimension_semantics=("parallel",),
                vmem_limit_bytes=_VMEM_LIMIT_BYTES,
            ),
        )(aspect)
    else:
        # Tiny / awkward shapes: fused XLA path beats custom-call overhead.
        mean = _aspect_mean_jnp(aspect).astype(out_dtype)

    if if_expand:
        # Expand outside the kernel: no redundant HBM writeback, XLA fuses the
        # broadcast into whatever consumes it (mirrors torch .expand, which is
        # also a view, not a copy).
        mean = jnp.broadcast_to(mean[:, None, :], (B, max_sen_len, E))
    return mean


# ----------------------------------------------------------------------------
# Reference + test
# ----------------------------------------------------------------------------
def _reference(aspect, max_sen_len, if_expand):
    out = _aspect_mean_jnp(aspect)
    if if_expand:
        out = jnp.broadcast_to(out[:, None, :],
                               (aspect.shape[0], max_sen_len, aspect.shape[2]))
    return out


if __name__ == "__main__":
    key = jax.random.PRNGKey(0)
    B, L, E = 16, 8, 128        # batch, max_asp_len, embed_size (lane-dense E)
    MAX_SEN_LEN = 24

    aspect = jax.random.normal(key, (B, L, E), dtype=jnp.float32)
    # Zero-pad trailing aspect tokens so aspect_len differs per batch element.
    lens = (jnp.arange(B) % L) + 1                            # lengths 1..L
    pad_mask = jnp.arange(L)[None, :, None] < lens[:, None, None]
    aspect = aspect * pad_mask.astype(aspect.dtype)

    # if_expand = False  (batch_block=8 -> grid of 2, exercises pipelining)
    out = aspect_mean(aspect, MAX_SEN_LEN, if_expand=False, batch_block=8)
    jax.block_until_ready(out)
    ref = _reference(aspect, MAX_SEN_LEN, False)
    assert out.shape == (B, E)
    assert jnp.allclose(out, ref, atol=1e-5, rtol=1e-5)

    # if_expand = True
    out_exp = aspect_mean(aspect, MAX_SEN_LEN, if_expand=True, batch_block=8)
    jax.block_until_ready(out_exp)
    ref_exp = _reference(aspect, MAX_SEN_LEN, True)
    assert out_exp.shape == (B, MAX_SEN_LEN, E)
    assert jnp.allclose(out_exp, ref_exp, atol=1e-5, rtol=1e-5)

    # Auto-picked batch tile path (tb chosen by _pick_batch_tile).
    out_auto = aspect_mean(aspect, MAX_SEN_LEN, if_expand=False)
    jax.block_until_ready(out_auto)
    assert jnp.allclose(out_auto, ref, atol=1e-5, rtol=1e-5)

    print("KERNEL_OK")
</pallas_src>

<mosaic_0001>
module attributes {stable_mosaic.version = 11 : i64} {
  func.func @_aspect_mean_kernel(%arg0: i32, %arg1: memref<8x8x128xf32, #tpu.memory_space<vmem>>, %arg2: memref<8x128xf32, #tpu.memory_space<vmem>>) attributes {dimension_semantics = [#tpu.dimension_semantics<parallel>], iteration_bounds = array<i64: 2>, scalar_prefetch = 0 : i64, scratch_operands = 0 : i64, tpu.core_type = #tpu.core_type<tc>, window_params = [{transform_indices = @transform_0, window_bounds = array<i64: 8, 8, 128>}, {transform_indices = @transform_1, window_bounds = array<i64: 8, 128>}]} {
    %c0 = arith.constant 0 : index
    %c0_0 = arith.constant 0 : index
    %c0_1 = arith.constant 0 : index
    %0 = vector.load %arg1[%c0, %c0_0, %c0_1] : memref<8x8x128xf32, #tpu.memory_space<vmem>>, vector<8x8x128xf32>
    %1 = math.absf %0 : vector<8x8x128xf32>
    %cst = arith.constant dense<0xFF800000> : vector<8x8xf32>
    %2 = vector.multi_reduction <maximumf>, %1, %cst [2] : vector<8x8x128xf32> to vector<8x8xf32>
    %cst_2 = arith.constant 0.000000e+00 : f32
    %3 = vector.broadcast %cst_2 : f32 to vector<8x8xf32>
    %4 = arith.cmpf one, %2, %3 : vector<8x8xf32>
    %5 = arith.extui %4 : vector<8x8xi1> to vector<8x8xi32>
    %6 = arith.sitofp %5 : vector<8x8xi32> to vector<8x8xf32>
    %cst_3 = arith.constant dense<0.000000e+00> : vector<8xf32>
    %7 = vector.multi_reduction <add>, %6, %cst_3 [1] : vector<8x8xf32> to vector<8xf32>
    %8 = vector.shape_cast %7 : vector<8xf32> to vector<8x1xf32>
    %cst_4 = arith.constant dense<0.000000e+00> : vector<8x128xf32>
    %9 = vector.multi_reduction <add>, %0, %cst_4 [1] : vector<8x8x128xf32> to vector<8x128xf32>
    %10 = vector.broadcast %8 : vector<8x1xf32> to vector<8x128xf32>
    %11 = arith.divf %9, %10 : vector<8x128xf32>
    %c0_5 = arith.constant 0 : index
    %c0_6 = arith.constant 0 : index
    %12 = vector.load %arg2[%c0_5, %c0_6] : memref<8x128xf32, #tpu.memory_space<vmem>>, vector<8x128xf32>
    tpu.vector_store %arg2[%c0_5, %c0_6], %11 {strides = array<i32>} : memref<8x128xf32, #tpu.memory_space<vmem>>, vector<8x128xf32>,
    return
  }
  func.func @transform_0(%arg0: i32) -> (i32, i32, i32) {
    %c0_i32 = arith.constant 0 : i32
    %c0_i32_0 = arith.constant 0 : i32
    %c0_i32_1 = arith.constant 0 : i32
    return %arg0, %c0_i32, %c0_i32_0 : i32, i32, i32
  }
  func.func @transform_1(%arg0: i32) -> (i32, i32) {
    %c0_i32 = arith.constant 0 : i32
    %c0_i32_0 = arith.constant 0 : i32
    return %arg0, %c0_i32 : i32, i32
  }
}

</mosaic_0001>

<bundles_post_ra>
// kernel: tpu_custom_call.1
= control target key start
LH: loop header
LB: loop body
LE: loop exit
PB: predicated region body
PF: predicated region fallthrough
CT: control target
= control target key end

     0   :  { %6 = vsyncpa [#allocation3], 0  ;;  %s856_s0 = inlined_call_operand.hbm [shape: f32[16,8,128], index: 0, kind: input, shape index: {}]   ;;  %s857_s1 = inlined_call_operand.hbm [shape: f32[16,128], index: 1, kind: output, shape index: {}]  }
   0x1   :  { %8 = vsyncpa [#allocation3 + $0x1], 0 }
   0x2   :  { %9 = vsyncpa [#allocation4], 0 }
   0x3   :  { %11 = vsyncpa [#allocation4 + $0x1], 0  ;;  %s641_s6 = smov 0   ;;  %s643_s7 = smov 0  }
   0x4   :  { %s645_s8 = smov 0   ;;  %s647_s9 = smov 0  }
   0x5 LB: > { %s662_s10 = sadd.s32 4294967295, %s624_s9   ;;  %s441_s11 = sadd.s32 4294967294, %s624_s9   ;;  %s624_s9 = sphi %s647_s9, %s870_s9   ;;  %s620_s8 = sphi %s645_s8, %s869_s8   ;;  %s616_s7 = sphi %s643_s7, %s868_s7   ;;  %s612_s6 = sphi %s641_s6, %s867_s6  }
   0x6   : > { %s666_s12 = sadd.s32 1, %s624_s9   ;;  %s24_s13 = sadd.s32 1, %s620_s8 }
   0x7   : > { %s21_s14 = ssub.s32 %s624_s9, %s666_s12  ;;  %p31_p0 = scmp.ne.s32.totalorder %s620_s8, %s616_s7 }
   0x8   : > { %p22_p1 = scmp.eq.s32.totalorder %s21_s14, 0  ;;  %p32_p2 = scmp.eq.s32.totalorder %s624_s9, 0 }
   0x9   : > { %p37_p3 = scmp.ne.s32.totalorder %s616_s7, %s612_s6  ;;  %p38_p4 = scmp.eq.s32.totalorder %s662_s10, 0 }
   0xa   : > { %s678_s15 = scalar_select %p22_p1, %s620_s8, %s24_s13  }
   0xb   : > { %p680_p5 = por %p32_p2, %p31_p0  ;;  %p684_p6 = por %p38_p4, %p37_p3 }
   0xc   : > { %p61_p7 = scmp.eq.s32.totalorder %s662_s10, 1  ;;  %p67_p8 = scmp.eq.s32.totalorder %s441_s11, 1 }
   0xd   : > { %p475_p10 = scmp.lt.s32.totalorder %s624_s9, 2  ;;  %s87_s20 = sand.u32 1, %s620_s8  }
   0xe   : > { %p691_p11 = por %p61_p7, %p31_p0  ;;  %p695_p12 = por %p67_p8, %p37_p3 }
   0xf   : > { %s462_s21 = sshll.u32 %s624_s9, 10  ;;  %s444_s22 = sshll.u32 %s87_s20, 6 }
  0x10   : > { %s861_s18 = scalar_select %p691_p11, 1, 0 }
  0x11   : > { %s862_s19 = scalar_select %p695_p12, 1, 0 }
  0x12   : > { %s704_s25 = scalar_lea.hbm %s856_s0, %s462_s21  ;;  %s91_s26 = scalar_lea.vmem [#allocation2], %s444_s22 }
  0x13   : > { %s98_s27 = sshll.u32 %s91_s26, 4  ;;  %p708_p13 = pnand %p475_p10, %p680_p5  ;;  %s712_s27 = int_to_ptr.vmem [resolvable:$true] %s98_s27 }
  0x14   : > { %s714_s29 = scalar_lea.sflag [#allocation3], %s87_s20  ;;  %s528_s30 = scalar_lea.hbm %s704_s25, 1024 }
  0x15   : > { %p529_p0 = scmp.ne.s32.totalorder %s704_s25, %s528_s30  ;;  %p530_p1 = pneg %p708_p13 }
  0x16   : > { %s533_s4 = scalar_lea.hbm %s856_s0, 2048  ;;  %p534_p4 = scmp.lt.u32.totalorder %s704_s25, %s856_s0 }
  0x17   : > { %p531_p2 = pnand %p530_p1, %p529_p0  ;;  %p535_p5 = scmp.lt.u32.totalorder %s533_s4, %s528_s30 }
  0x18   : > { %p537_p8 = scmp.lt.u32.totalorder %s528_s30, %s704_s25 }
  0x19   : > { %p532_p3 = pneg %p531_p2  ;;  %p536_p7 = por %p535_p5, %p534_p4 }
  0x1b   : > { %p538_p10 = por %p537_p8, %p536_p7 }
  0x1d   : > { %p539_p9 = pnand %p538_p10, %p532_p3 }
  0x1f   : > { %542 = shalt.err (!%p539_p9)
}
  0x20   : > { %s543_s13 = scalar_lea.vmem %s712_s27, 1024  ;;  %s626_s14 = smov [#allocation2]  }
  0x21   : > { %p544_p0 = scmp.ne.s32.totalorder %s712_s27, %s543_s13  ;;  %s548_s16 = sshll.u32 %s626_s14, 4  ;;  %s549_s16 = int_to_ptr.vmem [resolvable:$false] %s548_s16 }
  0x22   : > { %s550_s20 = scalar_lea.vmem %s549_s16, 2048  ;;  %p551_p11 = scmp.lt.s32.totalorder %s712_s27, %s549_s16 }
  0x23   : > { %p546_p2 = pnand %p544_p0, %p530_p1  ;;  %p552_p4 = scmp.lt.s32.totalorder %s550_s20, %s543_s13 }
  0x25   : > { %p547_p12 = pneg %p546_p2  ;;  %p553_p5 = por %p552_p4, %p551_p11 }
  0x27   : > { %p554_p7 = pnand %p553_p5, %p547_p12 }
  0x29   : > { %557 = shalt.err (!%p554_p7)
}
  0x2a   : > { %s627_s21 = smov 128   ;;  %s628_s22 = smov 8  }
  0x2b   : > { %470 = dma.hbm_to_vmem [thread:$0]  (!%p708_p13), %s704_s25, 1024, %s712_s27, %s714_s29, %s627_s21, %s627_s21, %s628_s22  }
  0x2c   : > { %p447_p9 = scmp.ge.s32.totalorder %s624_s9, 1  ;;  %p106_p1 = scmp.lt.s32.totalorder %s624_s9, 3 }
  0x2e   : > { %p107_p3 = pnand %p447_p9, %p106_p1 }
  0x2f   : > { %s745_s23 = sand.u32 (!%p107_p3), 1, %s616_s7  }
  0x30   : > { %110 = sbr.rel (%p107_p3) target bundleno = 400 (0x190), region = 24  ;;  %s448_s24 = sshll.u32 (!%p107_p3), %s745_s23, 6 }
  0x31   : > { %s113_s26 = scalar_lea.sflag (!%p107_p3), [#allocation3], %s745_s23  ;;  %s116_s30 = scalar_lea.vmem (!%p107_p3), [#allocation2], %s448_s24 }
  0x37   : > { %603 = dma.done.wait (%p684_p6), %s113_s26, 1024  }
  0x38   : > { %605 = vsyncadd (%p684_p6), %s113_s26, 4294966272  ;;  %v753_v0 = vld [vmem:[%s116_s30] sm:$0xff]  ;;  %v755_v1 = vld [vmem:[%s116_s30 + $0x10] sm:$0xff]  ;;  %v200_v16 = vlaneseq  ;;  %v629_v22 = vmov 0.0   ;;  %vm234_vm4 = vcmask 1041409   ;;  %vm236_vm5 = vcmask 1042434  }
  0x39   : > { %v757_v2 = vld [vmem:[%s116_s30 + $0x8] sm:$0xff]  ;;  %v144_v3 = vand.u32 2147483647, %v753_v0  ;;  %v146_v4 = vand.u32 2147483647, %v755_v1  ;;  %v761_v5 = vld [vmem:[%s116_s30 + $0x18] sm:$0xff] }
  0x3a   : > { %v145_v6 = vand.u32 2147483647, %v757_v2  ;;  %v147_v7 = vand.u32 2147483647, %v761_v5  ;;  %v765_v8 = vld [vmem:[%s116_s30 + $0x20] sm:$0xff]  ;;  %v767_v9 = vld [vmem:[%s116_s30 + $0x28] sm:$0xff] }
  0x3b   : > { %152 = vmax.xlane.f32.xlu0 %v144_v3  ;;  %156 = vmax.xlane.f32.xlu1 %v146_v4  ;;  %v148_v10 = vand.u32 2147483647, %v765_v8  ;;  %v149_v11 = vand.u32 2147483647, %v767_v9  ;;  %v771_v12 = vld [vmem:[%s116_s30 + $0x30] sm:$0xff]  ;;  %v773_v13 = vld [vmem:[%s116_s30 + $0x38] sm:$0xff] }
  0x3c   : > { %v150_v14 = vand.u32 2147483647, %v771_v12  ;;  %v151_v15 = vand.u32 2147483647, %v773_v13  ;;  %v201_v17 = vand.u32 127, %v200_v16  ;;  %v203_v18 = vshrl.u32 %v200_v16, 7 }
  0x3d   : > { %vm238_vm6 = vcmask 1043459   ;;  %vm240_vm9 = vcmask 1044484   ;;  %vm242_vm12 = vcmask 1045509   ;;  %vm244_vm13 = vcmask 1046534   ;;  %s449_s17 = sshll.u32 %s745_s23, 3  ;;  %s459_s25 = sshll.u32 %s662_s10, 7 }
  0x3e   : > { %v204_v21 = vsub.s32 %v201_v17, %v203_v18  ;;  %vm246_vm14 = vcmask 1047559   ;;  %vm249_vm15 = vcmask 64512   ;;  %v253_v53 = vrot.slane %v753_v0, 4  ;;  %s134_s27 = scalar_lea.vmem [#allocation5], %s449_s17  ;;  %s811_s3 = scalar_lea.hbm %s857_s1, %s459_s25 }
  0x3f   : > { %154 = vmax.xlane.f32.xlu0 %v145_v6  ;;  %158 = vmax.xlane.f32.xlu1 %v147_v7  ;;  %v259_v54 = vrot.slane %v757_v2, 4  ;;  %v265_v55 = vrot.slane %v755_v1, 4  ;;  %v271_v57 = vrot.slane %v761_v5, 4  ;;  %v277_v58 = vrot.slane %v765_v8, 4  ;;  %s371_s28 = sshll.u32 %s134_s27, 4  ;;  %s358_s10 = scalar_lea.sflag [#allocation4], %s745_s23  ;;  %s813_s28 = int_to_ptr.vmem [resolvable:$true] %s371_s28 }
  0x40   : > { %v254_v56 = vadd.f32 %v253_v53, %v753_v0  ;;  %v283_v60 = vrot.slane %v767_v9, 4  ;;  %v289_v62 = vrot.slane %v771_v12, 4  ;;  %v295_v4 = vrot.slane %v773_v13, 4  ;;  %s558_s4 = scalar_lea.vmem %s813_s28, 128  ;;  %p864_p11 = scmp.ne.s32.totalorder %s861_s18, 0 }
  0x41   : > { %v260_v59 = vadd.f32 %v259_v54, %v757_v2  ;;  %v266_v61 = vadd.f32 %v265_v55, %v755_v1  ;;  %v272_v3 = vadd.f32 %v271_v57, %v761_v5  ;;  %v278_v6 = vadd.f32 %v277_v58, %v765_v8  ;;  %p559_p6 = scmp.ne.s32.totalorder %s813_s28, %s558_s4  ;;  %s630_s5 = smov [#allocation5]  }
  0x42   : > { %v255_v63 = vrot.slane %v254_v56, 2  ;;  %v284_v7 = vadd.f32 %v283_v60, %v767_v9  ;;  %s562_s11 = sshll.u32 %s630_s5, 4  ;;  %s563_s11 = int_to_ptr.vmem [resolvable:$false] %s562_s11 }
  0x43   : > { %160 = vmax.xlane.f32.xlu0 %v148_v10  ;;  %162 = vmax.xlane.f32.xlu1 %v149_v11  ;;  %v261_v0 = vrot.slane %v260_v59, 2  ;;  %v267_v10 = vrot.slane %v266_v61, 2  ;;  %v290_v11 = vadd.f32 %v289_v62, %v771_v12  ;;  %v279_v16 = vrot.slane %v278_v6, 2  ;;  %p560_p12 = pnand %p559_p6, %p864_p11  ;;  %s564_s13 = scalar_lea.vmem %s563_s11, 256 }
  0x44   : > { %v256_v2 = vadd.f32 %v255_v63, %v254_v56  ;;  %p565_p8 = scmp.lt.s32.totalorder %s813_s28, %s563_s11  ;;  %p566_p10 = scmp.lt.s32.totalorder %s564_s13, %s558_s4 }
  0x45   : > { %v262_v5 = vadd.f32 %v261_v0, %v260_v59  ;;  %v268_v8 = vadd.f32 %v267_v10, %v266_v61  ;;  %p561_p13 = pneg %p560_p12 }
  0x46   : > { %p567_p0 = por %p566_p10, %p565_p8 }
  0x47   : > { %164 = vmax.xlane.f32.xlu0 %v150_v14  ;;  %166 = vmax.xlane.f32.xlu1 %v151_v15  ;;  %v273_v14 = vrot.slane %v272_v3, 2  ;;  %v296_v15 = vadd.f32 %v295_v4, %v773_v13  ;;  %v263_v13 = vrot.slane %v262_v5, 1 }
  0x48   : > { %p568_p2 = pnand %p567_p0, %p561_p13 }
  0x49   : > { %v274_v9 = vadd.f32 %v273_v14, %v272_v3 }
  0xc8   : > { %v153_v19 = vpop.xlane.xlu0 %152  ;;  %v157_v20 = vpop.xlane.xlu1 %156 }
  0xc9   : > { %vm168_vm0 = vcmp.ne.f32.partialorder %v153_v19, 0.0  ;;  %vm170_vm1 = vcmp.ne.f32.partialorder %v157_v20, 0.0  ;;  %v285_v20 = vrot.slane %v284_v7, 2 }
  0xca   : > { %v450_v23 = vsel %vm168_vm0, 1.0, %v629_v22  ;;  %v452_v26 = vsel %vm170_vm1, 1.0, %v629_v22 }
  0xcb   : > { %v205_v29 = vrot.slane %v450_v23, %v204_v21  ;;  %v213_v32 = vrot.slane %v452_v26, %v204_v21 }
  0xcc   : > { %v155_v24 = vpop.xlane.xlu0 %154  ;;  %v159_v25 = vpop.xlane.xlu1 %158 }
  0xcd   : > { %vm169_vm2 = vcmp.ne.f32.partialorder %v155_v24, 0.0  ;;  %vm171_vm3 = vcmp.ne.f32.partialorder %v159_v25, 0.0  ;;  %v297_v24 = vrot.slane %v296_v15, 2  ;;  %v280_v25 = vadd.f32 %v279_v16, %v278_v6 }
  0xce   : > { %v451_v27 = vsel %vm169_vm2, 1.0, %v629_v22  ;;  %v453_v28 = vsel %vm171_vm3, 1.0, %v629_v22 }
  0xcf   : > { %v209_v30 = vrot.slane %v451_v27, %v204_v21  ;;  %v217_v31 = vrot.slane %v453_v28, %v204_v21  ;;  %v286_v27 = vadd.f32 %v285_v20, %v284_v7  ;;  %v269_v28 = vrot.slane %v268_v8, 1 }
  0xd0   : > { %v161_v33 = vpop.xlane.xlu0 %160  ;;  %v163_v34 = vpop.xlane.xlu1 %162 }
  0xd1   : > { %v235_v35 = vsel %vm234_vm4, %v209_v30, %v205_v29  ;;  %vm172_vm7 = vcmp.ne.f32.partialorder %v161_v33, 0.0  ;;  %vm173_vm8 = vcmp.ne.f32.partialorder %v163_v34, 0.0  ;;  %v257_v30 = vrot.slane %v256_v2, 1 }
  0xd2   : > { %v237_v36 = vsel %vm236_vm5, %v213_v32, %v235_v35  ;;  %v454_v37 = vsel %vm172_vm7, 1.0, %v629_v22  ;;  %v455_v38 = vsel %vm173_vm8, 1.0, %v629_v22  ;;  %v298_v32 = vadd.f32 %v297_v24, %v296_v15 }
  0xd3   : > { %v239_v39 = vsel %vm238_vm6, %v217_v31, %v237_v36  ;;  %v221_v40 = vrot.slane %v454_v37, %v204_v21  ;;  %v225_v41 = vrot.slane %v455_v38, %v204_v21  ;;  %v275_v31 = vrot.slane %v274_v9, 1 }
  0xd4   : > { %v165_v42 = vpop.xlane.xlu0 %164  ;;  %v167_v43 = vpop.xlane.xlu1 %166  ;;  %v281_v33 = vrot.slane %v280_v25, 1  ;;  %v264_v34 = vadd.f32 %v263_v13, %v262_v5  ;;  %v287_v35 = vrot.slane %v286_v27, 1  ;;  %v270_v36 = vadd.f32 %v269_v28, %v268_v8 }
  0xd5   : > { %v241_v44 = vsel %vm240_vm9, %v221_v40, %v239_v39  ;;  %vm174_vm10 = vcmp.ne.f32.partialorder %v165_v42, 0.0  ;;  %vm175_vm11 = vcmp.ne.f32.partialorder %v167_v43, 0.0  ;;  %v258_v39 = vadd.f32 %v257_v30, %v256_v2 }
  0xd6   : > { %v456_v45 = vsel %vm174_vm10, 1.0, %v629_v22  ;;  %v457_v46 = vsel %vm175_vm11, 1.0, %v629_v22  ;;  %v243_v49 = vsel %vm242_vm12, %v225_v41, %v241_v44  ;;  %v291_v22 = vrot.slane %v290_v11, 2 }
  0xd7   : > { %v229_v47 = vrot.slane %v456_v45, %v204_v21  ;;  %v233_v48 = vrot.slane %v457_v46, %v204_v21  ;;  %v276_v40 = vadd.f32 %v275_v31, %v274_v9  ;;  %v299_v41 = vrot.slane %v298_v32, 1 }
  0xd8   : > { %v292_v29 = vadd.f32 %v291_v22, %v290_v11  ;;  %v282_v43 = vadd.f32 %v281_v33, %v280_v25  ;;  %v288_v45 = vadd.f32 %v287_v35, %v286_v27 }
  0xd9   : > { %v245_v50 = vsel %vm244_vm13, %v229_v47, %v243_v49 }
  0xda   : > { %v247_v51 = vsel %vm246_vm14, %v233_v48, %v245_v50  ;;  %v293_v37 = vrot.slane %v292_v29, 1 }
  0xdb   : > { %v250_v52 = vsel %vm249_vm15, %v247_v51, 0.0  ;;  %v300_v51 = vadd.f32 %v299_v41, %v298_v32 }
  0xdc   : > { %251 = vadd.xlane.f32.xlu0 %v250_v52  ;;  %v294_v48 = vadd.f32 %v293_v37, %v292_v29 }
 0x169   : > { %v252_v1 = vpop.xlane.xlu0 %251 }
 0x16a   : > { %v302_v17 = vrot.slane %v252_v1, 1  ;;  %v303_v18 = vrot.slane %v252_v1, 2  ;;  %v304_v19 = vrot.slane %v252_v1, 3  ;;  %v305_v21 = vrot.slane %v252_v1, 4 }
 0x16b   : > { %512 = vrcp.f32 %v252_v1  ;;  %v306_v23 = vrot.slane %v252_v1, 5  ;;  %v307_v12 = vrot.slane %v252_v1, 6  ;;  %v308_v26 = vrot.slane %v252_v1, 7 }
 0x16c   : > { %514 = vrcp.f32 %v302_v17 }
 0x16d   : > { %516 = vrcp.f32 %v303_v18 }
 0x16e   : > { %518 = vrcp.f32 %v304_v19 }
 0x16f   : > { %520 = vrcp.f32 %v305_v21 }
 0x170   : > { %522 = vrcp.f32 %v306_v23 }
 0x171   : > { %524 = vrcp.f32 %v307_v12 }
 0x172   : > { %526 = vrcp.f32 %v308_v26 }
 0x175   : > { %v513_v38 = vpop.eup %512 }
 0x176   : > { %v515_v42 = vpop.eup %514  ;;  %v318_v52 = vmul.f32 %v513_v38, %v258_v39 }
 0x177   : > { %v517_v44 = vpop.eup %516  ;;  %v320_v46 = vmul.f32 %v515_v42, %v264_v34 }
 0x178   : > { %v519_v47 = vpop.eup %518  ;;  %v322_v49 = vmul.f32 %v517_v44, %v270_v36 }
 0x179   : > { %v521_v50 = vpop.eup %520  ;;  %v324_v53 = vmul.f32 %v519_v47, %v276_v40  ;;  %v341_v54 = vrot.slane %v320_v46, 7 }
 0x17a   : > { %v523_v55 = vpop.eup %522  ;;  %v326_v56 = vmul.f32 %v521_v50, %v282_v43  ;;  %v343_v57 = vrot.slane %v322_v49, 6 }
 0x17b   : > { %v525_v58 = vpop.eup %524  ;;  %v328_v59 = vmul.f32 %v523_v55, %v288_v45  ;;  %v342_v60 = vsel %vm234_vm4, %v341_v54, %v318_v52  ;;  %v345_v61 = vrot.slane %v324_v53, 5 }
 0x17c   : > { %v527_v62 = vpop.eup %526  ;;  %v330_v63 = vmul.f32 %v525_v58, %v294_v48  ;;  %v344_v3 = vsel %vm236_vm5, %v343_v57, %v342_v60  ;;  %v347_v4 = vrot.slane %v326_v56, 4 }
 0x17d   : > { %v332_v6 = vmul.f32 %v527_v62, %v300_v51  ;;  %v346_v0 = vsel %vm238_vm6, %v345_v61, %v344_v3  ;;  %v349_v7 = vrot.slane %v328_v59, 3 }
 0x17e   : > { %v348_v10 = vsel %vm240_vm9, %v347_v4, %v346_v0  ;;  %v351_v11 = vrot.slane %v330_v63, 2 }
 0x17f   : > { %v350_v2 = vsel %vm242_vm12, %v349_v7, %v348_v10  ;;  %v353_v14 = vrot.slane %v332_v6, 1 }
 0x180   : > { %v352_v15 = vsel %vm244_vm13, %v351_v11, %v350_v2 }
 0x181   : > { %v354_v1 = vsel %vm246_vm14, %v353_v14, %v352_v15 }
 0x182   : > { %356 = vst [vmem:[%s134_s27] sm:$0xff] %v354_v1 }
 0x183   : > { %571 = shalt.err (!%p568_p2)
}
 0x184   : > { %s572_s14 = scalar_lea.hbm %s811_s3, 128  ;;  %s576_s21 = scalar_lea.hbm %s857_s1, 256 }
 0x185   : > { %p573_p4 = scmp.ne.s32.totalorder %s811_s3, %s572_s14  ;;  %p577_p9 = scmp.lt.u32.totalorder %s811_s3, %s857_s1 }
 0x186   : > { %p578_p1 = scmp.lt.u32.totalorder %s576_s21, %s572_s14  ;;  %p580_p6 = scmp.lt.u32.totalorder %s572_s14, %s811_s3 }
 0x187   : > { %p574_p5 = pnand %p573_p4, %p864_p11 }
 0x188   : > { %p579_p3 = por %p578_p1, %p577_p9 }
 0x189   : > { %p575_p7 = pneg %p574_p5 }
 0x18a   : > { %p581_p12 = por %p580_p6, %p579_p3 }
 0x18c   : > { %p582_p13 = pnand %p581_p12, %p575_p7 }
 0x18e   : > { %585 = shalt.err (!%p582_p13)
}
 0x18f   : > { %465 = dma.vmem_to_hbm [thread:$0]  (%p864_p11), %s813_s28, 128, %s811_s3, %s358_s10  }
 0x190 PF: > { %s383_s24 = sand.u32 1, %s612_s6   ;;  %p865_p8 = scmp.ne.s32.totalorder %s862_s19, 0 }
 0x191   : > { %p866_p10 = scmp.ge.s32.totalorder %s624_s9, 2  ;;  %s384_s26 = scalar_lea.sflag [#allocation4], %s383_s24 }
 0x193   : > { %p472_p0 = pnand %p866_p10, %p865_p8 }
 0x195   : > { %607 = dma.done.wait (!%p472_p0), %s384_s26, 128  }
 0x196   : > { %609 = vsyncadd (!%p472_p0), %s384_s26, 4294967168  ;;  %p14_p2 = scmp.ge.s32.totalorder %s666_s12, 4   ;;  %s867_s6 = smov %s616_s7 }
 0x197   : > { %s868_s7 = smov %s620_s8  ;;  %s869_s8 = smov %s678_s15 }
 0x198   : > { %s870_s9 = smov %s666_s12  ;;  %16 = sbr.rel (!%p14_p2) target bundleno = 5 (0x5), region = 69 }
 0x19f   :  { %389 = vsyncpa [#allocation3], 1 }
 0x1a0   :  { %391 = vsyncpa [#allocation3 + $0x1], 1 }
 0x1a1   :  { %392 = vsyncpa [#allocation4], 1 }
 0x1a2   :  { %394 = vsyncpa [#allocation4 + $0x1], 1 }

</bundles_post_ra>
